<compile_context>
chip_gen: v7x
topology: tpu7x:2x2x1
jax: 0.10.0
libtpu: 0.0.40
codegen_flags: <defaults>
</compile_context>

<pallas_src>
import functools

import jax
import jax.numpy as jnp
import numpy as np
from jax import lax
from jax.experimental import pallas as pl
from jax.experimental.pallas import tpu as pltpu

_MIB = 1024 * 1024


# ----------------------------------------------------------------------------
# small helpers
# ----------------------------------------------------------------------------
def _round_up(x, m):
    return ((x + m - 1) // m) * m


def _largest_divisor_leq(n, cap):
    for d in range(min(cap, n), 0, -1):
        if n % d == 0:
            return d
    return 1


def _itemsize(dt):
    return jnp.dtype(dt).itemsize


def _cparams(semantics, est_bytes=0):
    # raise the scoped VMEM limit above the default (16/32 MiB) but stay well
    # under v7x's 64 MiB physical VMEM
    limit = int(min(48 * _MIB, max(32 * _MIB, (est_bytes * 5) // 4)))
    return pltpu.CompilerParams(dimension_semantics=semantics,
                                vmem_limit_bytes=limit)


# ----------------------------------------------------------------------------
# Kernel 1: pointwise (1x1x1) conv (BN folded into weights) + bias + ReLU
#           (+ optional residual, used only when nb_temporal_conv == 0)
# ----------------------------------------------------------------------------
def _pw_bias_relu_kernel(x_ref, w_ref, b_ref, o_ref):
    y = jnp.dot(x_ref[...], w_ref[...], preferred_element_type=jnp.float32)
    y = y + b_ref[...]
    o_ref[...] = jnp.maximum(y, 0.0).astype(o_ref.dtype)


def _pw_bias_res_relu_kernel(x_ref, w_ref, b_ref, r_ref, o_ref):
    y = jnp.dot(x_ref[...], w_ref[...], preferred_element_type=jnp.float32)
    y = y + b_ref[...] + r_ref[...].astype(jnp.float32)
    o_ref[...] = jnp.maximum(y, 0.0).astype(o_ref.dtype)


def pointwise_bias_relu(x, w, b, *, residual=None, tm=1024, out_dtype=None):
    M, Cin = x.shape
    Cout = w.shape[1]
    out_dtype = x.dtype if out_dtype is None else out_dtype
    tm_eff = M if M <= tm else tm                  # tm default is a multiple of 8
    grid = (pl.cdiv(M, tm_eff),)
    ab = _itemsize(x.dtype)
    ob = _itemsize(out_dtype)
    est = 2 * (tm_eff * Cin * ab + Cin * Cout * ab + tm_eff * Cout * ob)
    x_spec = pl.BlockSpec((tm_eff, Cin), lambda i: (i, 0))
    w_spec = pl.BlockSpec((Cin, Cout), lambda i: (0, 0))
    b_spec = pl.BlockSpec((1, Cout), lambda i: (0, 0))
    o_spec = pl.BlockSpec((tm_eff, Cout), lambda i: (i, 0))
    if residual is None:
        return pl.pallas_call(
            _pw_bias_relu_kernel,
            out_shape=jax.ShapeDtypeStruct((M, Cout), out_dtype),
            grid=grid,
            in_specs=[x_spec, w_spec, b_spec],
            out_specs=o_spec,
            compiler_params=_cparams(("parallel",), est),
        )(x, w, b)
    est += 2 * tm_eff * Cout * _itemsize(residual.dtype)
    r_spec = pl.BlockSpec((tm_eff, Cout), lambda i: (i, 0))
    return pl.pallas_call(
        _pw_bias_res_relu_kernel,
        out_shape=jax.ShapeDtypeStruct((M, Cout), out_dtype),
        grid=grid,
        in_specs=[x_spec, w_spec, b_spec, r_spec],
        out_specs=o_spec,
        compiler_params=_cparams(("parallel",), est),
    )(x, w, b, residual)


# ----------------------------------------------------------------------------
# Kernel 2: spatial (1,3,3) conv (BN folded) + bias + ReLU, row-tiled per frame.
#
# The wrapper pre-pads each frame to (Hp+1, Wp_al) with Wp_al a multiple of 8
# and flattens (row, col) into one axis so every tap is a contiguous window
# load.  The 9 windows are lane-stacked into one (rows, 9*C) operand and go
# through the MXU as a single large-K matmul (single drain, K = 9*C).
# ----------------------------------------------------------------------------
def _spatial_kernel(x_ref, w_ref, b_ref, o_ref, *, Wp_al, dil):
    tr = o_ref.shape[1]
    W = o_ref.shape[2]
    r = pl.program_id(1)
    rows = tr * Wp_al
    base = r * rows
    wins = []
    for kh in range(3):                       # 9 static taps, lane-stacked
        a_start = pl.multiple_of(base + kh * Wp_al * dil, 8)
        for kw in range(3):
            wins.append(x_ref[0, pl.ds(a_start + kw * dil, rows), :])
    x9 = jnp.concatenate(wins, axis=1)        # (rows, 9*C)
    acc = jnp.dot(x9, w_ref[...], preferred_element_type=jnp.float32)
    y = acc.reshape(tr, Wp_al, -1)[:, :W, :] + b_ref[...]
    o_ref[...] = jnp.maximum(y, 0.0)[None].astype(o_ref.dtype)


def spatial_conv_bias_relu(frames, w, b, *, dilation=1, tr_cap=16, out_dtype=None):
    # frames: (NF, H, W, C) un-padded conv1 output; w: (9*C, Cout)
    NF, H, W, C = frames.shape
    Cout = w.shape[-1]
    out_dtype = frames.dtype if out_dtype is None else out_dtype
    Hp = H + 2 * dilation
    Wp_al = _round_up(W + 2 * dilation, 8)
    tr = _largest_divisor_leq(H, tr_cap)
    n_rt = H // tr
    # Halo pad (+1 extra bottom row so in-kernel tap windows never over-read the
    # block).  TODO(synk): fuse this pad into conv1's out_spec (zero buffer +
    # input_output_aliases) to remove the extra HBM pass of this tensor.
    padded = jnp.pad(frames, ((0, 0),
                              (dilation, dilation + 1),
                              (dilation, Wp_al - W - dilation),
                              (0, 0)))
    flat = padded.reshape(NF, (Hp + 1) * Wp_al, C)
    ab = _itemsize(frames.dtype)
    ob = _itemsize(out_dtype)
    rows = tr * Wp_al
    est = (2 * (Hp + 1) * Wp_al * C * ab + 2 * 9 * C * Cout * ab
           + 2 * tr * W * Cout * ob + rows * 9 * C * ab + rows * Cout * 4)
    kern = functools.partial(_spatial_kernel, Wp_al=Wp_al, dil=dilation)
    return pl.pallas_call(
        kern,
        out_shape=jax.ShapeDtypeStruct((NF, H, W, Cout), out_dtype),
        grid=(NF, n_rt),
        in_specs=[pl.BlockSpec((1, (Hp + 1) * Wp_al, C), lambda f, r: (f, 0, 0)),
                  pl.BlockSpec((9 * C, Cout), lambda f, r: (0, 0)),
                  pl.BlockSpec((1, Cout), lambda f, r: (0, 0))],
        out_specs=pl.BlockSpec((1, tr, W, Cout), lambda f, r: (f, r, 0, 0)),
        compiler_params=_cparams(("parallel", "arbitrary"), est),
    )(flat, w, b)


# ----------------------------------------------------------------------------
# Kernel 3: fused temporal chain [(3,1,1) conv + relu] * nb  +  conv3 (1x1x1)
#           + bn3 + residual + ReLU.  Temporal taps accumulate into an fp32
#           VMEM scratch via static slice adds (no zero-concat temporaries);
#           nb >= 2 convs are chained on the resident block (ping-pong scratch).
# ----------------------------------------------------------------------------
def _temporal_chain_conv3_kernel(x_ref, wt_ref, w3_ref, b3_ref, r_ref, o_ref,
                                 *scratch, nb):
    acc_ref = scratch[0]
    cur_ref = scratch[1] if nb > 1 else None
    D, thw, C = x_ref.shape[1], x_ref.shape[2], x_ref.shape[3]
    C4 = w3_ref.shape[1]
    n = D * thw
    cdt = x_ref.dtype

    src = x_ref[0].reshape(n, C)
    for i in range(nb):
        # out[d] = x[d-1] @ wt[0] + x[d] @ wt[1] + x[d+1] @ wt[2]   (zero pad in d)
        acc_ref[...] = jnp.dot(src, wt_ref[i, 1],
                               preferred_element_type=jnp.float32)
        if D > 1:
            acc_ref[thw:, :] += jnp.dot(src[:(D - 1) * thw], wt_ref[i, 0],
                                        preferred_element_type=jnp.float32)
            acc_ref[:(D - 1) * thw, :] += jnp.dot(src[thw:], wt_ref[i, 2],
                                                  preferred_element_type=jnp.float32)
        tact = jnp.maximum(acc_ref[...], 0.0).astype(cdt)
        if i + 1 < nb:
            cur_ref[...] = tact
            src = cur_ref[...]
        else:
            y = jnp.dot(tact, w3_ref[...], preferred_element_type=jnp.float32)
            y = y + b3_ref[...] + r_ref[0].reshape(n, C4).astype(jnp.float32)
            o_ref[...] = (jnp.maximum(y, 0.0)
                          .reshape(1, D, thw, C4).astype(o_ref.dtype))


def _temporal_need_bytes(thw, D, C, C4, ab, ob):
    # double-buffered x / residual / out blocks + fp32 acc + ping-pong scratch
    return (2 * D * thw * (C * ab + C4 * ab + C4 * ob)
            + D * thw * (C * 4 + C * ab))


def _pick_thw(HW, D, C, C4, ab, ob, budget):
    if _temporal_need_bytes(HW, D, C, C4, ab, ob) <= budget:
        return HW
    t = 8
    while (t + 8 < HW
           and _temporal_need_bytes(t + 8, D, C, C4, ab, ob) <= budget):
        t += 8
    for d in range(t, 7, -8):          # prefer a divisor of HW (no partial tiles)
        if HW % d == 0:
            return d
    return t


def temporal_chain_conv3_fused(t, wt, w3, b3, res, *, out_dtype,
                               vmem_budget=36 * _MIB):
    N, D, HW, C = t.shape
    C4 = w3.shape[1]
    nb = wt.shape[0]
    ab = _itemsize(t.dtype)
    ob = _itemsize(out_dtype)
    fixed = 2 * (wt.size * _itemsize(wt.dtype) + w3.size * _itemsize(w3.dtype)
                 + b3.size * 4)
    thw = _pick_thw(HW, D, C, C4, ab, ob, max(vmem_budget - fixed, 4 * _MIB))
    est = _temporal_need_bytes(thw, D, C, C4, ab, ob) + fixed

    scratch = [pltpu.VMEM((D * thw, C), jnp.float32)]
    if nb > 1:
        scratch.append(pltpu.VMEM((D * thw, C), t.dtype))

    kern = functools.partial(_temporal_chain_conv3_kernel, nb=nb)
    return pl.pallas_call(
        kern,
        out_shape=jax.ShapeDtypeStruct((N, D, HW, C4), out_dtype),
        grid=(N, pl.cdiv(HW, thw)),
        in_specs=[pl.BlockSpec((1, D, thw, C), lambda n, s: (n, 0, s, 0)),
                  pl.BlockSpec((nb, 3, C, C), lambda n, s: (0, 0, 0, 0)),
                  pl.BlockSpec((C, C4), lambda n, s: (0, 0)),
                  pl.BlockSpec((1, C4), lambda n, s: (0, 0)),
                  pl.BlockSpec((1, D, thw, C4), lambda n, s: (n, 0, s, 0))],
        out_specs=pl.BlockSpec((1, D, thw, C4), lambda n, s: (n, 0, s, 0)),
        scratch_shapes=scratch,
        compiler_params=_cparams(("parallel", "parallel"), est),
    )(t, wt, w3, b3, res)


# ----------------------------------------------------------------------------
# Parameter preparation: fold BN scale into weights, lane-pad planes channels,
# cast matmul operands to the compute dtype (bf16), keep biases fp32.
# ----------------------------------------------------------------------------
def prepare_params(params, *, lane_pad=128, compute_dtype=jnp.bfloat16):
    planes = params['w1'].shape[1]
    Cp = _round_up(planes, lane_pad)
    pp = Cp - planes

    w1 = jnp.pad(params['w1'] * params['s1'][None, :], ((0, 0), (0, pp)))
    b1 = jnp.pad(params['b1'], (0, pp)).reshape(1, Cp)

    w2 = params['w2'] * params['s2'][None, None, None, :]
    w2 = jnp.pad(w2, ((0, 0), (0, 0), (0, pp), (0, pp))).reshape(9 * Cp, Cp)
    b2 = jnp.pad(params['b2'], (0, pp)).reshape(1, Cp)

    if len(params['wt']) > 0:
        wt = jnp.stack([jnp.pad(w, ((0, 0), (0, pp), (0, pp)))
                        for w in params['wt']]).astype(compute_dtype)
    else:
        wt = None

    w3 = jnp.pad(params['w3'] * params['s3'][None, :], ((0, pp), (0, 0)))
    b3 = params['b3'].reshape(1, -1)

    return dict(w1=w1.astype(compute_dtype), b1=b1.astype(jnp.float32),
                w2=w2.astype(compute_dtype), b2=b2.astype(jnp.float32),
                wt=wt,
                w3=w3.astype(compute_dtype), b3=b3.astype(jnp.float32),
                Cp=Cp)


# ----------------------------------------------------------------------------
# Forward wrapper
# ----------------------------------------------------------------------------
def bottleneck2_1d_forward(x_ncdhw, params, *, dilation=1, nb_temporal_conv=1,
                           tm=1024, tr_cap=16, lane_pad=128,
                           compute_dtype=jnp.bfloat16,
                           temporal_vmem_budget=36 * _MIB):
    N, Cin, D, H, W = x_ncdhw.shape
    planes = params['w1'].shape[1]
    assert Cin == 4 * planes, "downsample=None requires inplanes == planes*4"
    out_dtype = x_ncdhw.dtype

    p = prepare_params(params, lane_pad=lane_pad, compute_dtype=compute_dtype)
    Cp = p['Cp']

    # NCDHW -> NDHWC; the dtype convert fuses into the transpose, so bf16
    # activations halve the HBM write of the transposed copy.
    x = jnp.transpose(x_ncdhw, (0, 2, 3, 4, 1)).astype(compute_dtype)
    M = N * D * H * W

    # conv1 (1x1x1) + bn1 + relu   (lane-padded to Cp output channels, bf16 out)
    h = pointwise_bias_relu(x.reshape(M, Cin), p['w1'], p['b1'], tm=tm,
                            out_dtype=compute_dtype)

    # conv2 (1,3,3) + bn2 + relu   (row-tiled, dilated, single K=9*Cp matmul)
    h = spatial_conv_bias_relu(h.reshape(N * D, H, W, Cp), p['w2'], p['b2'],
                               dilation=dilation, tr_cap=tr_cap,
                               out_dtype=compute_dtype)

    t = h.reshape(N, D, H * W, Cp)

    if nb_temporal_conv >= 1:
        assert len(params['wt']) >= nb_temporal_conv
        wt = p['wt'][:nb_temporal_conv]
        res = x.reshape(N, D, H * W, Cin)
        out = temporal_chain_conv3_fused(t, wt, p['w3'], p['b3'], res,
                                         out_dtype=out_dtype,
                                         vmem_budget=temporal_vmem_budget)
        out = out.reshape(N, D, H, W, Cin)
    else:
        out = pointwise_bias_relu(t.reshape(M, Cp), p['w3'], p['b3'],
                                  residual=x.reshape(M, Cin), tm=tm,
                                  out_dtype=out_dtype)
        out = out.reshape(N, D, H, W, Cin)
    return jnp.transpose(out, (0, 4, 1, 2, 3))            # NDHWC -> NCDHW


# ----------------------------------------------------------------------------
# Plain-JAX reference (lax.conv) for numerical verification
# ----------------------------------------------------------------------------
def reference_forward(x, params, dilation=1, nb_temporal_conv=1):
    def conv(v, w_oidhw, padding=((0, 0), (0, 0), (0, 0)), dil=(1, 1, 1)):
        return lax.conv_general_dilated(
            v, w_oidhw, (1, 1, 1), padding, rhs_dilation=dil,
            dimension_numbers=('NCDHW', 'OIDHW', 'NCDHW'))

    relu = lambda v: jnp.maximum(v, 0.0)
    bn = lambda v, s, b: v * s.reshape(1, -1, 1, 1, 1) + b.reshape(1, -1, 1, 1, 1)

    planes = params['w1'].shape[1]
    w1 = params['w1'].T.reshape(planes, -1, 1, 1, 1)
    w2 = jnp.transpose(params['w2'], (3, 2, 0, 1))[:, :, None, :, :]
    w3 = params['w3'].T.reshape(4 * planes, planes, 1, 1, 1)

    out = relu(bn(conv(x, w1), params['s1'], params['b1']))
    out = relu(bn(conv(out, w2,
                       padding=((0, 0), (dilation, dilation), (dilation, dilation)),
                       dil=(1, dilation, dilation)),
                  params['s2'], params['b2']))
    for i in range(nb_temporal_conv):
        wt = jnp.transpose(params['wt'][i], (2, 1, 0))[:, :, :, None, None]
        out = relu(conv(out, wt, padding=((1, 1), (0, 0), (0, 0))))
    out = bn(conv(out, w3), params['s3'], params['b3'])
    return relu(out + x)


def fold_bn(gamma, beta, mean, var, eps=1e-5):
    scale = gamma / jnp.sqrt(var + eps)
    return scale, beta - mean * scale


if __name__ == "__main__":
    # Small shapes: batch=2, planes=8, inplanes=4*planes=32, D=4, H=W=8
    N, planes, D, H, W = 2, 8, 4, 8, 8
    inplanes = 4 * planes
    nb_temporal_conv = 1
    dilation = 1

    key = jax.random.PRNGKey(0)
    keys = jax.random.split(key, 8)

    def bn_params(k, c):
        k1, k2, k3, k4 = jax.random.split(k, 4)
        gamma = 1.0 + 0.1 * jax.random.normal(k1, (c,), jnp.float32)
        beta = 0.1 * jax.random.normal(k2, (c,), jnp.float32)
        mean = 0.1 * jax.random.normal(k3, (c,), jnp.float32)
        var = 1.0 + 0.1 * jnp.abs(jax.random.normal(k4, (c,), jnp.float32))
        return fold_bn(gamma, beta, mean, var)

    s1, b1 = bn_params(keys[0], planes)
    s2, b2 = bn_params(keys[1], planes)
    s3, b3 = bn_params(keys[2], 4 * planes)

    params = dict(
        w1=0.1 * jax.random.normal(keys[3], (inplanes, planes), jnp.float32),
        w2=0.1 * jax.random.normal(keys[4], (3, 3, planes, planes), jnp.float32),
        wt=[0.1 * jax.random.normal(keys[5], (3, planes, planes), jnp.float32)
            for _ in range(nb_temporal_conv)],
        w3=0.1 * jax.random.normal(keys[6], (planes, 4 * planes), jnp.float32),
        s1=s1, b1=b1, s2=s2, b2=b2, s3=s3, b3=b3,
    )

    x = jax.random.normal(keys[7], (N, inplanes, D, H, W), jnp.float32)

    ref = jax.block_until_ready(
        reference_forward(x, params, dilation=dilation,
                          nb_temporal_conv=nb_temporal_conv))

    # Semantics check with fp32 compute (tight tolerance).
    out_f32 = jax.block_until_ready(
        bottleneck2_1d_forward(x, params, dilation=dilation,
                               nb_temporal_conv=nb_temporal_conv,
                               compute_dtype=jnp.float32))
    assert out_f32.shape == (N, inplanes, D, H, W)
    np.testing.assert_allclose(np.asarray(out_f32), np.asarray(ref),
                               atol=2e-3, rtol=2e-3)

    # Production config: bf16 MXU operands, fp32 accumulation (looser tolerance).
    out_bf16 = jax.block_until_ready(
        bottleneck2_1d_forward(x, params, dilation=dilation,
                               nb_temporal_conv=nb_temporal_conv))
    assert out_bf16.shape == (N, inplanes, D, H, W)
    np.testing.assert_allclose(np.asarray(out_bf16), np.asarray(ref),
                               atol=4e-2, rtol=4e-2)

    print("KERNEL_OK")
</pallas_src>

<mosaic_0001>
module attributes {stable_mosaic.version = 11 : i64} {
  func.func @_pw_bias_relu_kernel(%arg0: i32, %arg1: memref<512x32xf32, #tpu.memory_space<vmem>>, %arg2: memref<32x128xf32, #tpu.memory_space<vmem>>, %arg3: memref<1x128xf32, #tpu.memory_space<vmem>>, %arg4: memref<512x128xf32, #tpu.memory_space<vmem>>) attributes {dimension_semantics = [#tpu.dimension_semantics<parallel>], iteration_bounds = array<i64: 1>, scalar_prefetch = 0 : i64, scratch_operands = 0 : i64, tpu.core_type = #tpu.core_type<tc>, window_params = [{transform_indices = @transform_0, window_bounds = array<i64: 512, 32>}, {pipeline_mode = #tpu.pipeline_mode<synchronous>, transform_indices = @transform_1, window_bounds = array<i64: 32, 128>}, {pipeline_mode = #tpu.pipeline_mode<synchronous>, transform_indices = @transform_2, window_bounds = array<i64: 1, 128>}, {transform_indices = @transform_3, window_bounds = array<i64: 512, 128>}]} {
    %c0 = arith.constant 0 : index
    %c0_0 = arith.constant 0 : index
    %0 = vector.load %arg1[%c0, %c0_0] : memref<512x32xf32, #tpu.memory_space<vmem>>, vector<512x32xf32>
    %c0_1 = arith.constant 0 : index
    %c0_2 = arith.constant 0 : index
    %1 = vector.load %arg2[%c0_1, %c0_2] : memref<32x128xf32, #tpu.memory_space<vmem>>, vector<32x128xf32>
    %cst = arith.constant dense<0.000000e+00> : vector<512x128xf32>
    %2 = tpu.matmul %0, %1, %cst {dimension_numbers = #tpu.dot_dimension_numbers<[1], [0], [0], [1], [0, 0, 1, 1], [], []>} : vector<512x32xf32>, vector<32x128xf32>, vector<512x128xf32> -> vector<512x128xf32>
    %c0_3 = arith.constant 0 : index
    %c0_4 = arith.constant 0 : index
    %3 = vector.load %arg3[%c0_3, %c0_4] : memref<1x128xf32, #tpu.memory_space<vmem>>, vector<1x128xf32>
    %4 = vector.broadcast %3 : vector<1x128xf32> to vector<512x128xf32>
    %5 = arith.addf %2, %4 : vector<512x128xf32>
    %cst_5 = arith.constant 0.000000e+00 : f32
    %6 = vector.broadcast %cst_5 : f32 to vector<512x128xf32>
    %7 = arith.maximumf %5, %6 : vector<512x128xf32>
    %c0_6 = arith.constant 0 : index
    %c0_7 = arith.constant 0 : index
    %8 = vector.load %arg4[%c0_6, %c0_7] : memref<512x128xf32, #tpu.memory_space<vmem>>, vector<512x128xf32>
    tpu.vector_store %arg4[%c0_6, %c0_7], %7 {strides = array<i32>} : memref<512x128xf32, #tpu.memory_space<vmem>>, vector<512x128xf32>,
    return
  }
  func.func @transform_0(%arg0: i32) -> (i32, i32) {
    %c0_i32 = arith.constant 0 : i32
    %c0_i32_0 = arith.constant 0 : i32
    return %arg0, %c0_i32 : i32, i32
  }
  func.func @transform_1(%arg0: i32) -> (i32, i32) {
    %c0_i32 = arith.constant 0 : i32
    %c0_i32_0 = arith.constant 0 : i32
    %c0_i32_1 = arith.constant 0 : i32
    return %c0_i32, %c0_i32_0 : i32, i32
  }
  func.func @transform_2(%arg0: i32) -> (i32, i32) {
    %c0_i32 = arith.constant 0 : i32
    %c0_i32_0 = arith.constant 0 : i32
    %c0_i32_1 = arith.constant 0 : i32
    return %c0_i32, %c0_i32_0 : i32, i32
  }
  func.func @transform_3(%arg0: i32) -> (i32, i32) {
    %c0_i32 = arith.constant 0 : i32
    %c0_i32_0 = arith.constant 0 : i32
    return %arg0, %c0_i32 : i32, i32
  }
}

</mosaic_0001>

<bundles_post_ra>
// kernel: tpu_custom_call.1
= control target key start
LH: loop header
LB: loop body
LE: loop exit
PB: predicated region body
PF: predicated region fallthrough
CT: control target
= control target key end

     0   :  { %vm90_vm0 = vcmask 261120   ;;  %s1460_s0 = inlined_call_operand.vmem [shape: f32[512,32], index: 0, kind: input, shape index: {}]   ;;  %s1461_s1 = inlined_call_operand.vmem [shape: f32[32,128], index: 1, kind: input, shape index: {}]   ;;  %s1462_s2 = inlined_call_operand.vmem [shape: f32[1,128], index: 2, kind: input, shape index: {}]   ;;  %s1463_s3 = inlined_call_operand.hbm [shape: f32[512,128], index: 3, kind: output, shape index: {}]  }
   0x1   :  { %v79_v0 = vld [vmem:[%s1461_s1] sm:$0xff]  ;;  %v80_v1 = vld [vmem:[%s1461_s1 + $0x8] sm:$0xff]  ;;  %v81_v2 = vld [vmem:[%s1461_s1 + $0x10] sm:$0xff] }
   0x2   :  { %v1049_v3 = vpack.c.bf16 %v80_v1, %v79_v0  ;;  %v82_v4 = vld [vmem:[%s1461_s1 + $0x18] sm:$0xff]  ;;  %v15_v5 = vld [vmem:[%s1460_s0] sm:$0xff]  ;;  %v16_v8 = vld [vmem:[%s1460_s0 + $0x8] sm:$0xff] }
   0x3   :  { %v47_v6 = vld [vmem:[%s1460_s0 + $0x100] sm:$0xff]  ;;  %v1053_v7 = vpack.c.bf16 %v82_v4, %v81_v2  ;;  %953 = vmatprep.mubr.msk.f32.mxu0 %vm90_vm0, %v15_v5  ;;  %v48_v9 = vld [vmem:[%s1460_s0 + $0x108] sm:$0xff]  ;;  %v17_v10 = vld [vmem:[%s1460_s0 + $0x10] sm:$0xff] }
   0x4   :  { %1001 = vmatprep.mubr.msk.f32.mxu1 %vm90_vm0, %v47_v6  ;;  %1050 = vmatprep.subr.bf16.mxu0 %v1049_v3  ;;  %v49_v11 = vld [vmem:[%s1460_s0 + $0x110] sm:$0xff]  ;;  %v18_v12 = vld [vmem:[%s1460_s0 + $0x18] sm:$0xff]  ;;  %v19_v14 = vld [vmem:[%s1460_s0 + $0x20] sm:$0xff] }
   0x5   :  { %1057 = vmatprep.subr.bf16.mxu1 %v1049_v3  ;;  %1052 = vmatpush3.bf16.msra.mxu0 %v1049_v3  ;;  %v50_v13 = vld [vmem:[%s1460_s0 + $0x118] sm:$0xff]  ;;  %v51_v15 = vld [vmem:[%s1460_s0 + $0x120] sm:$0xff]  ;;  %v20_v16 = vld [vmem:[%s1460_s0 + $0x28] sm:$0xff] }
   0x6   :  { %1059 = vmatpush3.bf16.msra.mxu1 %v1049_v3  ;;  %1054 = vmatprep.subr.bf16.mxu0 %v1053_v7  ;;  %v52_v17 = vld [vmem:[%s1460_s0 + $0x128] sm:$0xff]  ;;  %v21_v18 = vld [vmem:[%s1460_s0 + $0x30] sm:$0xff]  ;;  %v22_v20 = vld [vmem:[%s1460_s0 + $0x38] sm:$0xff] }
   0x7   :  { %1058 = vmatprep.subr.bf16.mxu1 %v1053_v7  ;;  %v53_v19 = vld [vmem:[%s1460_s0 + $0x130] sm:$0xff]  ;;  %v54_v21 = vld [vmem:[%s1460_s0 + $0x138] sm:$0xff]  ;;  %v23_v22 = vld [vmem:[%s1460_s0 + $0x40] sm:$0xff] }
   0x8   :  { %v55_v23 = vld [vmem:[%s1460_s0 + $0x140] sm:$0xff] }
   0x9   :  { %1056 = vmatpush3.bf16.msra.mxu0 %v1053_v7 }
   0xa   :  { %1060 = vmatpush3.bf16.msra.mxu1 %v1053_v7 }
   0xc   :  { %954 = vmatmul.mubr.msk.f32.vlgmr.msra.gmra.mrb[0].mxu0 %vm90_vm0, %v16_v8 }
   0xd   :  { %1002 = vmatmul.mubr.msk.f32.vlgmr.msra.gmra.mrb[0].mxu1 %vm90_vm0, %v48_v9  ;;  %956 = vmatprep.mubr.msk.f32.mxu0 %vm90_vm0, %v17_v10 }
   0xe   :  { %1004 = vmatprep.mubr.msk.f32.mxu1 %vm90_vm0, %v49_v11 }
  0x10   :  { %957 = vmatmul.mubr.msk.f32.gmra.mrb[2].mxu0 %vm90_vm0, %v18_v12 }
  0x11   :  { %1005 = vmatmul.mubr.msk.f32.gmra.mrb[2].mxu1 %vm90_vm0, %v50_v13  ;;  %959 = vmatprep.mubr.msk.f32.mxu0 %vm90_vm0, %v19_v14 }
  0x12   :  { %1007 = vmatprep.mubr.msk.f32.mxu1 %vm90_vm0, %v51_v15 }
  0x14   :  { %960 = vmatmul.mubr.msk.f32.gmra.mrb[4].mxu0 %vm90_vm0, %v20_v16 }
  0x15   :  { %1008 = vmatmul.mubr.msk.f32.gmra.mrb[4].mxu1 %vm90_vm0, %v52_v17  ;;  %962 = vmatprep.mubr.msk.f32.mxu0 %vm90_vm0, %v21_v18 }
  0x16   :  { %1010 = vmatprep.mubr.msk.f32.mxu1 %vm90_vm0, %v53_v19 }
  0x17   :  { %8 = vsyncpa [#allocation3], 0  ;;  %v24_v24 = vld [vmem:[%s1460_s0 + $0x48] sm:$0xff]  ;;  %v25_v26 = vld [vmem:[%s1460_s0 + $0x50] sm:$0xff] }
  0x18   :  { %963 = vmatmul.mubr.msk.f32.gmra.mrb[6].mxu0 %vm90_vm0, %v22_v20  ;;  %v56_v25 = vld [vmem:[%s1460_s0 + $0x148] sm:$0xff]  ;;  %v57_v27 = vld [vmem:[%s1460_s0 + $0x150] sm:$0xff]  ;;  %v26_v28 = vld [vmem:[%s1460_s0 + $0x58] sm:$0xff] }
  0x19   :  { %1011 = vmatmul.mubr.msk.f32.gmra.mrb[6].mxu1 %vm90_vm0, %v54_v21  ;;  %965 = vmatprep.mubr.msk.f32.mxu0 %vm90_vm0, %v23_v22  ;;  %v58_v29 = vld [vmem:[%s1460_s0 + $0x158] sm:$0xff]  ;;  %v27_v30 = vld [vmem:[%s1460_s0 + $0x60] sm:$0xff]  ;;  %v28_v32 = vld [vmem:[%s1460_s0 + $0x68] sm:$0xff] }
  0x1a   :  { %1013 = vmatprep.mubr.msk.f32.mxu1 %vm90_vm0, %v55_v23  ;;  %v59_v31 = vld [vmem:[%s1460_s0 + $0x160] sm:$0xff]  ;;  %v60_v33 = vld [vmem:[%s1460_s0 + $0x168] sm:$0xff]  ;;  %v29_v34 = vld [vmem:[%s1460_s0 + $0x70] sm:$0xff] }
  0x1b   :  { %v61_v35 = vld [vmem:[%s1460_s0 + $0x170] sm:$0xff]  ;;  %v30_v36 = vld [vmem:[%s1460_s0 + $0x78] sm:$0xff]  ;;  %v31_v38 = vld [vmem:[%s1460_s0 + $0x80] sm:$0xff] }
  0x1c   :  { %966 = vmatmul.mubr.msk.f32.gmra.mrb[8].mxu0 %vm90_vm0, %v24_v24  ;;  %v62_v37 = vld [vmem:[%s1460_s0 + $0x178] sm:$0xff]  ;;  %v63_v39 = vld [vmem:[%s1460_s0 + $0x180] sm:$0xff]  ;;  %v32_v40 = vld [vmem:[%s1460_s0 + $0x88] sm:$0xff] }
  0x1d   :  { %1014 = vmatmul.mubr.msk.f32.gmra.mrb[8].mxu1 %vm90_vm0, %v56_v25  ;;  %968 = vmatprep.mubr.msk.f32.mxu0 %vm90_vm0, %v25_v26  ;;  %v64_v41 = vld [vmem:[%s1460_s0 + $0x188] sm:$0xff]  ;;  %v33_v42 = vld [vmem:[%s1460_s0 + $0x90] sm:$0xff]  ;;  %v34_v44 = vld [vmem:[%s1460_s0 + $0x98] sm:$0xff] }
  0x1e   :  { %1016 = vmatprep.mubr.msk.f32.mxu1 %vm90_vm0, %v57_v27  ;;  %v65_v43 = vld [vmem:[%s1460_s0 + $0x190] sm:$0xff]  ;;  %v66_v45 = vld [vmem:[%s1460_s0 + $0x198] sm:$0xff]  ;;  %v35_v46 = vld [vmem:[%s1460_s0 + $0xa0] sm:$0xff] }
  0x1f   :  { %v67_v47 = vld [vmem:[%s1460_s0 + $0x1a0] sm:$0xff]  ;;  %v36_v48 = vld [vmem:[%s1460_s0 + $0xa8] sm:$0xff]  ;;  %v37_v50 = vld [vmem:[%s1460_s0 + $0xb0] sm:$0xff] }
  0x20   :  { %969 = vmatmul.mubr.msk.f32.gmra.mrb[10].mxu0 %vm90_vm0, %v26_v28  ;;  %v68_v49 = vld [vmem:[%s1460_s0 + $0x1a8] sm:$0xff]  ;;  %v69_v51 = vld [vmem:[%s1460_s0 + $0x1b0] sm:$0xff]  ;;  %v38_v52 = vld [vmem:[%s1460_s0 + $0xb8] sm:$0xff] }
  0x21   :  { %1017 = vmatmul.mubr.msk.f32.gmra.mrb[10].mxu1 %vm90_vm0, %v58_v29  ;;  %971 = vmatprep.mubr.msk.f32.mxu0 %vm90_vm0, %v27_v30  ;;  %v70_v53 = vld [vmem:[%s1460_s0 + $0x1b8] sm:$0xff]  ;;  %v39_v54 = vld [vmem:[%s1460_s0 + $0xc0] sm:$0xff]  ;;  %v40_v56 = vld [vmem:[%s1460_s0 + $0xc8] sm:$0xff] }
  0x22   :  { %1019 = vmatprep.mubr.msk.f32.mxu1 %vm90_vm0, %v59_v31  ;;  %v71_v55 = vld [vmem:[%s1460_s0 + $0x1c0] sm:$0xff]  ;;  %v72_v57 = vld [vmem:[%s1460_s0 + $0x1c8] sm:$0xff]  ;;  %v41_v58 = vld [vmem:[%s1460_s0 + $0xd0] sm:$0xff] }
  0x23   :  { %v73_v59 = vld [vmem:[%s1460_s0 + $0x1d0] sm:$0xff]  ;;  %v42_v60 = vld [vmem:[%s1460_s0 + $0xd8] sm:$0xff]  ;;  %v43_v62 = vld [vmem:[%s1460_s0 + $0xe0] sm:$0xff] }
  0x24   :  { %972 = vmatmul.mubr.msk.f32.gmra.mrb[12].mxu0 %vm90_vm0, %v28_v32  ;;  %v74_v61 = vld [vmem:[%s1460_s0 + $0x1d8] sm:$0xff]  ;;  %v75_v63 = vld [vmem:[%s1460_s0 + $0x1e0] sm:$0xff]  ;;  %v44_v0 = vld [vmem:[%s1460_s0 + $0xe8] sm:$0xff] }
  0x25   :  { %1020 = vmatmul.mubr.msk.f32.gmra.mrb[12].mxu1 %vm90_vm0, %v60_v33  ;;  %974 = vmatprep.mubr.msk.f32.mxu0 %vm90_vm0, %v29_v34  ;;  %v76_v1 = vld [vmem:[%s1460_s0 + $0x1e8] sm:$0xff]  ;;  %v45_v2 = vld [vmem:[%s1460_s0 + $0xf0] sm:$0xff]  ;;  %v46_v4 = vld [vmem:[%s1460_s0 + $0xf8] sm:$0xff] }
  0x26   :  { %1022 = vmatprep.mubr.msk.f32.mxu1 %vm90_vm0, %v61_v35  ;;  %v77_v3 = vld [vmem:[%s1460_s0 + $0x1f0] sm:$0xff]  ;;  %v78_v5 = vld [vmem:[%s1460_s0 + $0x1f8] sm:$0xff]  ;;  %v1382_v6 = vld [vmem:[%s1462_s2] ss:$0 sm:$0xff]  ;;  %s1088_s0 = smov [#allocation2]  }
  0x27   :  { %s801_s2 = sshll.u32 %s1088_s0, 4  ;;  %s802_s2 = int_to_ptr.vmem [resolvable:$true] %s801_s2 }
  0x28   :  { %975 = vmatmul.mubr.msk.f32.gmra.mrb[14].mxu0 %vm90_vm0, %v30_v36  ;;  %s1064_s10 = scalar_lea.vmem %s802_s2, 8192  ;;  %p1069_p1 = scmp.lt.s32.totalorder %s802_s2, %s802_s2 }
  0x29   :  { %1023 = vmatmul.mubr.msk.f32.gmra.mrb[14].mxu1 %vm90_vm0, %v62_v37  ;;  %977 = vmatprep.mubr.msk.f32.mxu0 %vm90_vm0, %v31_v38  ;;  %p1065_p0 = scmp.ne.s32.totalorder %s802_s2, %s1064_s10  ;;  %p1070_p2 = scmp.lt.s32.totalorder %s1064_s10, %s1064_s10 }
  0x2a   :  { %1025 = vmatprep.mubr.msk.f32.mxu1 %vm90_vm0, %v63_v39 }
  0x2b   :  { %p1071_p3 = por %p1070_p2, %p1069_p1 }
  0x2c   :  { %978 = vmatmul.mubr.msk.f32.gmra.mrb[16].mxu0 %vm90_vm0, %v32_v40 }
  0x2d   :  { %1026 = vmatmul.mubr.msk.f32.gmra.mrb[16].mxu1 %vm90_vm0, %v64_v41  ;;  %980 = vmatprep.mubr.msk.f32.mxu0 %vm90_vm0, %v33_v42  ;;  %p1072_p4 = pnand %p1071_p3, %p1065_p0 }
  0x2e   :  { %1028 = vmatprep.mubr.msk.f32.mxu1 %vm90_vm0, %v65_v43 }
  0x30   :  { %981 = vmatmul.mubr.msk.f32.gmra.mrb[18].mxu0 %vm90_vm0, %v34_v44 }
  0x31   :  { %1029 = vmatmul.mubr.msk.f32.gmra.mrb[18].mxu1 %vm90_vm0, %v66_v45  ;;  %983 = vmatprep.mubr.msk.f32.mxu0 %vm90_vm0, %v35_v46 }
  0x32   :  { %1031 = vmatprep.mubr.msk.f32.mxu1 %vm90_vm0, %v67_v47 }
  0x34   :  { %984 = vmatmul.mubr.msk.f32.gmra.mrb[20].mxu0 %vm90_vm0, %v36_v48 }
  0x35   :  { %1032 = vmatmul.mubr.msk.f32.gmra.mrb[20].mxu1 %vm90_vm0, %v68_v49  ;;  %986 = vmatprep.mubr.msk.f32.mxu0 %vm90_vm0, %v37_v50 }
  0x36   :  { %1034 = vmatprep.mubr.msk.f32.mxu1 %vm90_vm0, %v69_v51 }
  0x38   :  { %987 = vmatmul.mubr.msk.f32.gmra.mrb[22].mxu0 %vm90_vm0, %v38_v52 }
  0x39   :  { %1035 = vmatmul.mubr.msk.f32.gmra.mrb[22].mxu1 %vm90_vm0, %v70_v53  ;;  %989 = vmatprep.mubr.msk.f32.mxu0 %vm90_vm0, %v39_v54 }
  0x3a   :  { %1037 = vmatprep.mubr.msk.f32.mxu1 %vm90_vm0, %v71_v55 }
  0x3c   :  { %990 = vmatmul.mubr.msk.f32.gmra.mrb[24].mxu0 %vm90_vm0, %v40_v56 }
  0x3d   :  { %1038 = vmatmul.mubr.msk.f32.gmra.mrb[24].mxu1 %vm90_vm0, %v72_v57  ;;  %992 = vmatprep.mubr.msk.f32.mxu0 %vm90_vm0, %v41_v58 }
  0x3e   :  { %1040 = vmatprep.mubr.msk.f32.mxu1 %vm90_vm0, %v73_v59 }
  0x40   :  { %993 = vmatmul.mubr.msk.f32.gmra.mrb[26].mxu0 %vm90_vm0, %v42_v60 }
  0x41   :  { %1041 = vmatmul.mubr.msk.f32.gmra.mrb[26].mxu1 %vm90_vm0, %v74_v61  ;;  %995 = vmatprep.mubr.msk.f32.mxu0 %vm90_vm0, %v43_v62 }
  0x42   :  { %1043 = vmatprep.mubr.msk.f32.mxu1 %vm90_vm0, %v75_v63 }
  0x44   :  { %996 = vmatmul.mubr.msk.f32.gmra.mrb[28].mxu0 %vm90_vm0, %v44_v0 }
  0x45   :  { %1044 = vmatmul.mubr.msk.f32.gmra.mrb[28].mxu1 %vm90_vm0, %v76_v1  ;;  %998 = vmatprep.mubr.msk.f32.mxu0 %vm90_vm0, %v45_v2 }
  0x46   :  { %1046 = vmatprep.mubr.msk.f32.mxu1 %vm90_vm0, %v77_v3 }
  0x48   :  { %999 = vmatmul.mubr.msk.f32.gmra.mrb[30].mxu0 %vm90_vm0, %v46_v4 }
  0x49   :  { %1047 = vmatmul.mubr.msk.f32.gmra.mrb[30].mxu1 %vm90_vm0, %v78_v5 }
  0xdf   :  { %v955_v7 = vpop.f32.mrb[0].mxu0 }
  0xe0   :  { %v1003_v8 = vpop.f32.mrb[0].mxu1  ;;  %v355_v9 = vadd.f32 %v955_v7, %v1382_v6  ;;  %v349_v11 = vpop.f32.mrb[1].mxu0 }
  0xe1   :  { %v515_v10 = vadd.f32 %v1003_v8, %v1382_v6  ;;  %v509_v12 = vpop.f32.mrb[1].mxu1  ;;  %v350_v13 = vadd.f32 %v1382_v6, %v349_v11 }
  0xe2   :  { %v510_v14 = vadd.f32 %v1382_v6, %v509_v12  ;;  %v669_v15 = vmax.f32 %v355_v9, 0.0 }
  0xe3   :  { %v701_v16 = vmax.f32 %v515_v10, 0.0  ;;  %v668_v17 = vmax.f32 %v350_v13, 0.0  ;;  %v958_v19 = vpop.f32.mrb[2].mxu0 }
  0xe4   :  { %v700_v18 = vmax.f32 %v510_v14, 0.0  ;;  %v1006_v20 = vpop.f32.mrb[2].mxu1  ;;  %733 = vst [vmem:[#allocation2 + $0x8] sm:$0xff] %v669_v15  ;;  %v365_v21 = vadd.f32 %v958_v19, %v1382_v6  ;;  %v359_v23 = vpop.f32.mrb[3].mxu0 }
  0xe5   :  { %765 = vst [vmem:[#allocation2 + $0x108] sm:$0xff] %v701_v16  ;;  %v525_v22 = vadd.f32 %v1006_v20, %v1382_v6  ;;  %v519_v24 = vpop.f32.mrb[3].mxu1  ;;  %732 = vst [vmem:[#allocation2] sm:$0xff] %v668_v17  ;;  %v360_v25 = vadd.f32 %v1382_v6, %v359_v23 }
  0xe6   :  { %764 = vst [vmem:[#allocation2 + $0x100] sm:$0xff] %v700_v18  ;;  %v520_v26 = vadd.f32 %v1382_v6, %v519_v24  ;;  %v671_v27 = vmax.f32 %v365_v21, 0.0 }
  0xe7   :  { %v703_v28 = vmax.f32 %v525_v22, 0.0  ;;  %v670_v29 = vmax.f32 %v360_v25, 0.0  ;;  %v961_v31 = vpop.f32.mrb[4].mxu0 }
  0xe8   :  { %v702_v30 = vmax.f32 %v520_v26, 0.0  ;;  %v1009_v32 = vpop.f32.mrb[4].mxu1  ;;  %735 = vst [vmem:[#allocation2 + $0x18] sm:$0xff] %v671_v27  ;;  %v375_v33 = vadd.f32 %v961_v31, %v1382_v6  ;;  %v369_v35 = vpop.f32.mrb[5].mxu0 }
  0xe9   :  { %767 = vst [vmem:[#allocation2 + $0x118] sm:$0xff] %v703_v28  ;;  %v535_v34 = vadd.f32 %v1009_v32, %v1382_v6  ;;  %v529_v36 = vpop.f32.mrb[5].mxu1  ;;  %734 = vst [vmem:[#allocation2 + $0x10] sm:$0xff] %v670_v29  ;;  %v370_v37 = vadd.f32 %v1382_v6, %v369_v35 }
  0xea   :  { %766 = vst [vmem:[#allocation2 + $0x110] sm:$0xff] %v702_v30  ;;  %v530_v38 = vadd.f32 %v1382_v6, %v529_v36  ;;  %v673_v39 = vmax.f32 %v375_v33, 0.0 }
  0xeb   :  { %v705_v40 = vmax.f32 %v535_v34, 0.0  ;;  %v672_v41 = vmax.f32 %v370_v37, 0.0  ;;  %v964_v43 = vpop.f32.mrb[6].mxu0 }
  0xec   :  { %v704_v42 = vmax.f32 %v530_v38, 0.0  ;;  %v1012_v44 = vpop.f32.mrb[6].mxu1  ;;  %737 = vst [vmem:[#allocation2 + $0x28] sm:$0xff] %v673_v39  ;;  %v385_v45 = vadd.f32 %v964_v43, %v1382_v6  ;;  %v379_v47 = vpop.f32.mrb[7].mxu0 }
  0xed   :  { %769 = vst [vmem:[#allocation2 + $0x128] sm:$0xff] %v705_v40  ;;  %v545_v46 = vadd.f32 %v1012_v44, %v1382_v6  ;;  %v539_v48 = vpop.f32.mrb[7].mxu1  ;;  %736 = vst [vmem:[#allocation2 + $0x20] sm:$0xff] %v672_v41  ;;  %v380_v49 = vadd.f32 %v1382_v6, %v379_v47 }
  0xee   :  { %768 = vst [vmem:[#allocation2 + $0x120] sm:$0xff] %v704_v42  ;;  %v540_v50 = vadd.f32 %v1382_v6, %v539_v48  ;;  %v675_v51 = vmax.f32 %v385_v45, 0.0 }
  0xef   :  { %v707_v52 = vmax.f32 %v545_v46, 0.0  ;;  %v674_v53 = vmax.f32 %v380_v49, 0.0  ;;  %v967_v55 = vpop.f32.mrb[8].mxu0 }
  0xf0   :  { %v706_v54 = vmax.f32 %v540_v50, 0.0  ;;  %v1015_v56 = vpop.f32.mrb[8].mxu1  ;;  %739 = vst [vmem:[#allocation2 + $0x38] sm:$0xff] %v675_v51  ;;  %v395_v57 = vadd.f32 %v967_v55, %v1382_v6  ;;  %v389_v59 = vpop.f32.mrb[9].mxu0 }
  0xf1   :  { %771 = vst [vmem:[#allocation2 + $0x138] sm:$0xff] %v707_v52  ;;  %v555_v58 = vadd.f32 %v1015_v56, %v1382_v6  ;;  %v549_v60 = vpop.f32.mrb[9].mxu1  ;;  %738 = vst [vmem:[#allocation2 + $0x30] sm:$0xff] %v674_v53  ;;  %v390_v61 = vadd.f32 %v1382_v6, %v389_v59 }
  0xf2   :  { %770 = vst [vmem:[#allocation2 + $0x130] sm:$0xff] %v706_v54  ;;  %v550_v62 = vadd.f32 %v1382_v6, %v549_v60  ;;  %v677_v63 = vmax.f32 %v395_v57, 0.0 }
  0xf3   :  { %v709_v0 = vmax.f32 %v555_v58, 0.0  ;;  %v676_v1 = vmax.f32 %v390_v61, 0.0  ;;  %v970_v3 = vpop.f32.mrb[10].mxu0 }
  0xf4   :  { %v708_v2 = vmax.f32 %v550_v62, 0.0  ;;  %v1018_v4 = vpop.f32.mrb[10].mxu1  ;;  %741 = vst [vmem:[#allocation2 + $0x48] sm:$0xff] %v677_v63  ;;  %v405_v5 = vadd.f32 %v970_v3, %v1382_v6  ;;  %v399_v8 = vpop.f32.mrb[11].mxu0 }
  0xf5   :  { %773 = vst [vmem:[#allocation2 + $0x148] sm:$0xff] %v709_v0  ;;  %v565_v7 = vadd.f32 %v1018_v4, %v1382_v6  ;;  %v559_v9 = vpop.f32.mrb[11].mxu1  ;;  %740 = vst [vmem:[#allocation2 + $0x40] sm:$0xff] %v676_v1  ;;  %v400_v10 = vadd.f32 %v1382_v6, %v399_v8 }
  0xf6   :  { %772 = vst [vmem:[#allocation2 + $0x140] sm:$0xff] %v708_v2  ;;  %v560_v11 = vadd.f32 %v1382_v6, %v559_v9  ;;  %v679_v12 = vmax.f32 %v405_v5, 0.0 }
  0xf7   :  { %v711_v13 = vmax.f32 %v565_v7, 0.0  ;;  %v678_v14 = vmax.f32 %v400_v10, 0.0  ;;  %v973_v16 = vpop.f32.mrb[12].mxu0 }
  0xf8   :  { %v710_v15 = vmax.f32 %v560_v11, 0.0  ;;  %v1021_v17 = vpop.f32.mrb[12].mxu1  ;;  %743 = vst [vmem:[#allocation2 + $0x58] sm:$0xff] %v679_v12  ;;  %v415_v18 = vadd.f32 %v973_v16, %v1382_v6  ;;  %v409_v20 = vpop.f32.mrb[13].mxu0 }
  0xf9   :  { %775 = vst [vmem:[#allocation2 + $0x158] sm:$0xff] %v711_v13  ;;  %v575_v19 = vadd.f32 %v1021_v17, %v1382_v6  ;;  %v569_v21 = vpop.f32.mrb[13].mxu1  ;;  %742 = vst [vmem:[#allocation2 + $0x50] sm:$0xff] %v678_v14  ;;  %v410_v22 = vadd.f32 %v1382_v6, %v409_v20 }
  0xfa   :  { %774 = vst [vmem:[#allocation2 + $0x150] sm:$0xff] %v710_v15  ;;  %v570_v23 = vadd.f32 %v1382_v6, %v569_v21  ;;  %v681_v24 = vmax.f32 %v415_v18, 0.0 }
  0xfb   :  { %v713_v25 = vmax.f32 %v575_v19, 0.0  ;;  %v680_v26 = vmax.f32 %v410_v22, 0.0  ;;  %v976_v28 = vpop.f32.mrb[14].mxu0 }
  0xfc   :  { %v712_v27 = vmax.f32 %v570_v23, 0.0  ;;  %v1024_v29 = vpop.f32.mrb[14].mxu1  ;;  %745 = vst [vmem:[#allocation2 + $0x68] sm:$0xff] %v681_v24  ;;  %v425_v30 = vadd.f32 %v976_v28, %v1382_v6  ;;  %v419_v32 = vpop.f32.mrb[15].mxu0 }
  0xfd   :  { %777 = vst [vmem:[#allocation2 + $0x168] sm:$0xff] %v713_v25  ;;  %v585_v31 = vadd.f32 %v1024_v29, %v1382_v6  ;;  %v579_v33 = vpop.f32.mrb[15].mxu1  ;;  %744 = vst [vmem:[#allocation2 + $0x60] sm:$0xff] %v680_v26  ;;  %v420_v34 = vadd.f32 %v1382_v6, %v419_v32 }
  0xfe   :  { %776 = vst [vmem:[#allocation2 + $0x160] sm:$0xff] %v712_v27  ;;  %v580_v35 = vadd.f32 %v1382_v6, %v579_v33  ;;  %v683_v36 = vmax.f32 %v425_v30, 0.0 }
  0xff   :  { %v715_v37 = vmax.f32 %v585_v31, 0.0  ;;  %v682_v38 = vmax.f32 %v420_v34, 0.0  ;;  %v979_v40 = vpop.f32.mrb[16].mxu0 }
 0x100   :  { %v714_v39 = vmax.f32 %v580_v35, 0.0  ;;  %v1027_v41 = vpop.f32.mrb[16].mxu1  ;;  %747 = vst [vmem:[#allocation2 + $0x78] sm:$0xff] %v683_v36  ;;  %v435_v42 = vadd.f32 %v979_v40, %v1382_v6  ;;  %v429_v44 = vpop.f32.mrb[17].mxu0 }
 0x101   :  { %779 = vst [vmem:[#allocation2 + $0x178] sm:$0xff] %v715_v37  ;;  %v595_v43 = vadd.f32 %v1027_v41, %v1382_v6  ;;  %v589_v45 = vpop.f32.mrb[17].mxu1  ;;  %746 = vst [vmem:[#allocation2 + $0x70] sm:$0xff] %v682_v38  ;;  %v430_v46 = vadd.f32 %v1382_v6, %v429_v44 }
 0x102   :  { %778 = vst [vmem:[#allocation2 + $0x170] sm:$0xff] %v714_v39  ;;  %v590_v47 = vadd.f32 %v1382_v6, %v589_v45  ;;  %v685_v48 = vmax.f32 %v435_v42, 0.0 }
 0x103   :  { %v717_v49 = vmax.f32 %v595_v43, 0.0  ;;  %v684_v50 = vmax.f32 %v430_v46, 0.0  ;;  %v982_v52 = vpop.f32.mrb[18].mxu0 }
 0x104   :  { %v716_v51 = vmax.f32 %v590_v47, 0.0  ;;  %v1030_v53 = vpop.f32.mrb[18].mxu1  ;;  %749 = vst [vmem:[#allocation2 + $0x88] sm:$0xff] %v685_v48  ;;  %v445_v54 = vadd.f32 %v982_v52, %v1382_v6  ;;  %v439_v56 = vpop.f32.mrb[19].mxu0 }
 0x105   :  { %781 = vst [vmem:[#allocation2 + $0x188] sm:$0xff] %v717_v49  ;;  %v605_v55 = vadd.f32 %v1030_v53, %v1382_v6  ;;  %v599_v57 = vpop.f32.mrb[19].mxu1  ;;  %748 = vst [vmem:[#allocation2 + $0x80] sm:$0xff] %v684_v50  ;;  %v440_v58 = vadd.f32 %v1382_v6, %v439_v56 }
 0x106   :  { %780 = vst [vmem:[#allocation2 + $0x180] sm:$0xff] %v716_v51  ;;  %v600_v59 = vadd.f32 %v1382_v6, %v599_v57  ;;  %v687_v60 = vmax.f32 %v445_v54, 0.0 }
 0x107   :  { %v719_v61 = vmax.f32 %v605_v55, 0.0  ;;  %v686_v62 = vmax.f32 %v440_v58, 0.0  ;;  %v985_v0 = vpop.f32.mrb[20].mxu0 }
 0x108   :  { %v718_v63 = vmax.f32 %v600_v59, 0.0  ;;  %v1033_v1 = vpop.f32.mrb[20].mxu1  ;;  %751 = vst [vmem:[#allocation2 + $0x98] sm:$0xff] %v687_v60  ;;  %v455_v2 = vadd.f32 %v985_v0, %v1382_v6  ;;  %v449_v4 = vpop.f32.mrb[21].mxu0 }
 0x109   :  { %783 = vst [vmem:[#allocation2 + $0x198] sm:$0xff] %v719_v61  ;;  %v615_v3 = vadd.f32 %v1033_v1, %v1382_v6  ;;  %v609_v5 = vpop.f32.mrb[21].mxu1  ;;  %750 = vst [vmem:[#allocation2 + $0x90] sm:$0xff] %v686_v62  ;;  %v450_v7 = vadd.f32 %v1382_v6, %v449_v4 }
 0x10a   :  { %782 = vst [vmem:[#allocation2 + $0x190] sm:$0xff] %v718_v63  ;;  %v610_v8 = vadd.f32 %v1382_v6, %v609_v5  ;;  %v689_v9 = vmax.f32 %v455_v2, 0.0 }
 0x10b   :  { %v721_v10 = vmax.f32 %v615_v3, 0.0  ;;  %v688_v11 = vmax.f32 %v450_v7, 0.0  ;;  %v988_v13 = vpop.f32.mrb[22].mxu0 }
 0x10c   :  { %v720_v12 = vmax.f32 %v610_v8, 0.0  ;;  %v1036_v14 = vpop.f32.mrb[22].mxu1  ;;  %753 = vst [vmem:[#allocation2 + $0xa8] sm:$0xff] %v689_v9  ;;  %v465_v15 = vadd.f32 %v988_v13, %v1382_v6  ;;  %v459_v17 = vpop.f32.mrb[23].mxu0 }
 0x10d   :  { %785 = vst [vmem:[#allocation2 + $0x1a8] sm:$0xff] %v721_v10  ;;  %v625_v16 = vadd.f32 %v1036_v14, %v1382_v6  ;;  %v619_v18 = vpop.f32.mrb[23].mxu1  ;;  %752 = vst [vmem:[#allocation2 + $0xa0] sm:$0xff] %v688_v11  ;;  %v460_v19 = vadd.f32 %v1382_v6, %v459_v17 }
 0x10e   :  { %784 = vst [vmem:[#allocation2 + $0x1a0] sm:$0xff] %v720_v12  ;;  %v620_v20 = vadd.f32 %v1382_v6, %v619_v18  ;;  %v691_v21 = vmax.f32 %v465_v15, 0.0 }
 0x10f   :  { %v723_v22 = vmax.f32 %v625_v16, 0.0  ;;  %v690_v23 = vmax.f32 %v460_v19, 0.0  ;;  %v991_v25 = vpop.f32.mrb[24].mxu0 }
 0x110   :  { %v722_v24 = vmax.f32 %v620_v20, 0.0  ;;  %v1039_v26 = vpop.f32.mrb[24].mxu1  ;;  %755 = vst [vmem:[#allocation2 + $0xb8] sm:$0xff] %v691_v21  ;;  %v475_v27 = vadd.f32 %v991_v25, %v1382_v6  ;;  %v469_v29 = vpop.f32.mrb[25].mxu0 }
 0x111   :  { %787 = vst [vmem:[#allocation2 + $0x1b8] sm:$0xff] %v723_v22  ;;  %v635_v28 = vadd.f32 %v1039_v26, %v1382_v6  ;;  %v629_v30 = vpop.f32.mrb[25].mxu1  ;;  %754 = vst [vmem:[#allocation2 + $0xb0] sm:$0xff] %v690_v23  ;;  %v470_v31 = vadd.f32 %v1382_v6, %v469_v29 }
 0x112   :  { %786 = vst [vmem:[#allocation2 + $0x1b0] sm:$0xff] %v722_v24  ;;  %v630_v32 = vadd.f32 %v1382_v6, %v629_v30  ;;  %v693_v33 = vmax.f32 %v475_v27, 0.0 }
 0x113   :  { %v725_v34 = vmax.f32 %v635_v28, 0.0  ;;  %v692_v35 = vmax.f32 %v470_v31, 0.0  ;;  %v994_v37 = vpop.f32.mrb[26].mxu0 }
 0x114   :  { %v724_v36 = vmax.f32 %v630_v32, 0.0  ;;  %v1042_v38 = vpop.f32.mrb[26].mxu1  ;;  %757 = vst [vmem:[#allocation2 + $0xc8] sm:$0xff] %v693_v33  ;;  %v485_v39 = vadd.f32 %v994_v37, %v1382_v6  ;;  %v479_v41 = vpop.f32.mrb[27].mxu0 }
 0x115   :  { %789 = vst [vmem:[#allocation2 + $0x1c8] sm:$0xff] %v725_v34  ;;  %v645_v40 = vadd.f32 %v1042_v38, %v1382_v6  ;;  %v639_v42 = vpop.f32.mrb[27].mxu1  ;;  %756 = vst [vmem:[#allocation2 + $0xc0] sm:$0xff] %v692_v35  ;;  %v480_v43 = vadd.f32 %v1382_v6, %v479_v41 }
 0x116   :  { %788 = vst [vmem:[#allocation2 + $0x1c0] sm:$0xff] %v724_v36  ;;  %v640_v44 = vadd.f32 %v1382_v6, %v639_v42  ;;  %v695_v45 = vmax.f32 %v485_v39, 0.0 }
 0x117   :  { %v727_v46 = vmax.f32 %v645_v40, 0.0  ;;  %v694_v47 = vmax.f32 %v480_v43, 0.0  ;;  %v997_v49 = vpop.f32.mrb[28].mxu0 }
 0x118   :  { %v726_v48 = vmax.f32 %v640_v44, 0.0  ;;  %v1045_v50 = vpop.f32.mrb[28].mxu1  ;;  %759 = vst [vmem:[#allocation2 + $0xd8] sm:$0xff] %v695_v45  ;;  %v495_v51 = vadd.f32 %v997_v49, %v1382_v6  ;;  %v489_v53 = vpop.f32.mrb[29].mxu0 }
 0x119   :  { %791 = vst [vmem:[#allocation2 + $0x1d8] sm:$0xff] %v727_v46  ;;  %v655_v52 = vadd.f32 %v1045_v50, %v1382_v6  ;;  %v649_v54 = vpop.f32.mrb[29].mxu1  ;;  %758 = vst [vmem:[#allocation2 + $0xd0] sm:$0xff] %v694_v47  ;;  %v490_v55 = vadd.f32 %v1382_v6, %v489_v53 }
 0x11a   :  { %790 = vst [vmem:[#allocation2 + $0x1d0] sm:$0xff] %v726_v48  ;;  %v650_v56 = vadd.f32 %v1382_v6, %v649_v54  ;;  %v697_v57 = vmax.f32 %v495_v51, 0.0 }
 0x11b   :  { %v729_v58 = vmax.f32 %v655_v52, 0.0  ;;  %v696_v59 = vmax.f32 %v490_v55, 0.0  ;;  %v1000_v61 = vpop.f32.mrb[30].mxu0 }
 0x11c   :  { %v728_v60 = vmax.f32 %v650_v56, 0.0  ;;  %v1048_v62 = vpop.f32.mrb[30].mxu1  ;;  %761 = vst [vmem:[#allocation2 + $0xe8] sm:$0xff] %v697_v57  ;;  %v505_v63 = vadd.f32 %v1000_v61, %v1382_v6  ;;  %v499_v1 = vpop.f32.mrb[31].mxu0 }
 0x11d   :  { %793 = vst [vmem:[#allocation2 + $0x1e8] sm:$0xff] %v729_v58  ;;  %v665_v0 = vadd.f32 %v1048_v62, %v1382_v6  ;;  %v659_v2 = vpop.f32.mrb[31].mxu1  ;;  %760 = vst [vmem:[#allocation2 + $0xe0] sm:$0xff] %v696_v59  ;;  %v500_v3 = vadd.f32 %v1382_v6, %v499_v1 }
 0x11e   :  { %792 = vst [vmem:[#allocation2 + $0x1e0] sm:$0xff] %v728_v60  ;;  %v660_v4 = vadd.f32 %v1382_v6, %v659_v2  ;;  %v699_v5 = vmax.f32 %v505_v63, 0.0 }
 0x11f   :  { %v731_v7 = vmax.f32 %v665_v0, 0.0  ;;  %v698_v8 = vmax.f32 %v500_v3, 0.0 }
 0x120   :  { %v730_v9 = vmax.f32 %v660_v4, 0.0  ;;  %763 = vst [vmem:[#allocation2 + $0xf8] sm:$0xff] %v699_v5 }
 0x121   :  { %795 = vst [vmem:[#allocation2 + $0x1f8] sm:$0xff] %v731_v7  ;;  %762 = vst [vmem:[#allocation2 + $0xf0] sm:$0xff] %v698_v8 }
 0x122   :  { %794 = vst [vmem:[#allocation2 + $0x1f0] sm:$0xff] %v730_v9 }
 0x123   :  { %1075 = shalt.err (!%p1072_p4)
}
 0x124   :  { %s1076_s13 = scalar_lea.hbm %s1463_s3, 8192 }
 0x125   :  { %p1077_p5 = scmp.ne.s32.totalorder %s1463_s3, %s1076_s13  ;;  %p1080_p6 = scmp.lt.u32.totalorder %s1076_s13, %s1463_s3 }
 0x127   :  { %p1082_p7 = pnand %p1080_p6, %p1077_p5 }
 0x129   :  { %1085 = shalt.err (!%p1082_p7)
}
 0x12a   :  { %s1089_s18 = smov 128   ;;  %s1090_s19 = smov 8  }
 0x12b   :  { %807 = dma.vmem_to_hbm [thread:$0]  %s802_s2, 8192, %s1463_s3, [#allocation3], %s1089_s18, %s1089_s18, %s1090_s19  }
 0x12c   :  { %1086 = dma.done.wait [#allocation3], 8192  }
 0x12d   :  { %1087 = vsyncadd [#allocation3], 4294959104 }
 0x12e   :  { %811 = vsyncpa [#allocation3], 1 }

</bundles_post_ra>
